<compile_context>
chip_gen: v7x
topology: tpu7x:2x2x1
jax: 0.10.0
libtpu: 0.0.40
codegen_flags: <defaults>
</compile_context>

<pallas_src>
import functools
import math

import jax
import jax.numpy as jnp
from jax import lax
from jax.experimental import pallas as pl
from jax.experimental.pallas import tpu as pltpu

# A @ B^T contraction (contract last dims) -- the standard "NT" MXU pattern.
_NT_DIMS = (((1,), (1,)), ((), ()))

_DEF_CHUNK = 2048                    # rows per inner compute step (multiple of 128)
_X_WINDOW_BYTES = 24 * 1024 * 1024   # lane-padded budget for the double-buffered x window


def fm_kernel(x_ref, vw_ref, s_ref, b_ref, o_ref, *, k, chunk, num_chunks):
    """One grid step: rows [i*tile_n, (i+1)*tile_n) of x -> lane-dense output row."""
    vw = vw_ref[...]          # (k+1, p): rows 0..k-1 = v^T, row k = linear weight
    s = s_ref[...]            # (1, p):   per-feature rowsum(v*v)
    b = b_ref[0, 0]           # scalar bias (SMEM)

    def one_chunk(off):
        xc = x_ref[pl.ds(off, chunk), :]                               # (chunk, p)
        # Fused MXU pass over x: yt[:k] = (x @ v)^T, yt[k] = (x @ w)^T.
        yt = lax.dot_general(vw, xc, _NT_DIMS,
                             preferred_element_type=jnp.float32)      # (k+1, chunk)
        # Second MXU pass over x^2 for the subtracted interaction term
        # (algebraic reduction: sum_k((x^2)@(v^2)) == (x^2) @ rowsum(v^2)).
        neg = lax.dot_general(s, xc * xc, _NT_DIMS,
                              preferred_element_type=jnp.float32)     # (1, chunk)
        xvt = yt[:k, :]
        sq = jnp.sum(xvt * xvt, axis=0, keepdims=True)                 # (1, chunk)
        lin = yt[k:k + 1, :]
        # Lane-dense store: every sample's scalar sits in the lane dimension.
        o_ref[:, pl.ds(off, chunk)] = lin + b + 0.5 * (sq - neg)

    if num_chunks == 1:
        one_chunk(0)
    else:
        def body(c, carry):
            one_chunk(pl.multiple_of(c * chunk, chunk))
            return carry
        lax.fori_loop(0, num_chunks, body, 0)


def _round_up(a, m):
    return ((a + m - 1) // m) * m


def _pick_tiles(n, p, tile_n, chunk):
    """Rows per grid step (tile_n) and per inner compute step (chunk).

    VMEM is budgeted with the lane-padded footprint: a (tile_n, p) f32 block is
    stored with the last dim padded to 128 lanes and is double-buffered, i.e.
    2 * tile_n * max(p,128) * 4 bytes.  The grid block must also be big enough
    that its HBM DMA time dwarfs the ~0.35us fixed per-grid-step overhead.
    """
    if chunk is None:
        chunk = _DEF_CHUNK
    chunk = max(1, chunk)
    if tile_n is None:
        lanes = max(_round_up(p, 128), 128)
        tile_n = max(_X_WINDOW_BYTES // (2 * 4 * lanes), 128)   # ~24K rows at p<=128
        # Prefer >= 8 grid steps (>= 4 per TensorCore on 2-TC chips) when that
        # still leaves >= ~1 MiB of raw x per step.
        min_rows = max(chunk, _round_up((1 << 20) // (4 * p), chunk))
        eighth = _round_up(-(-n // 8), chunk)
        if eighth >= min_rows:
            tile_n = min(tile_n, eighth)
    tile_n = max(1, min(tile_n, n))
    if tile_n < n:
        # Multi-step grid: keep the lane-dense (1, tile_n) output window and the
        # x window 128/8 aligned.
        tile_n = max((tile_n // 128) * 128, 128)
    chunk = max(1, min(chunk, tile_n))
    if chunk < tile_n:
        chunk = max((chunk // 128) * 128, 128)        # lane-aligned dynamic offsets
        if tile_n % chunk:
            chunk = math.gcd(tile_n, chunk)
        if chunk % 128 or tile_n % chunk:
            chunk = tile_n                            # fall back to one inner step
    return tile_n, chunk


def _vmem_limit(tile_n, chunk, p):
    lanes = max(_round_up(p, 128), 128)
    x_bytes = 2 * tile_n * lanes * 4          # double-buffered x window, lane-padded
    o_bytes = 2 * 8 * tile_n * 4              # (1, tile_n) output window, sublane-padded
    w_bytes = 4 * 32 * lanes * 4              # resident weights (generous)
    tmp_bytes = 6 * chunk * lanes * 4         # x*x, dot results, partial sums, etc.
    est = x_bytes + o_bytes + w_bytes + tmp_bytes + (4 << 20)
    # >= 32 MiB (cheap everywhere), <= 56 MiB (stays under v7x's 64 MiB physical).
    return int(min(max(est, 32 << 20), 56 << 20))


def fm_forward(x, v, w, b, *, tile_n=None, chunk=None):
    """x: (N, p), v: (p, k), w: (1, p) linear weight, b: bias (1 element) -> (N, 1)."""
    n, p = x.shape
    pv, k = v.shape
    assert pv == p
    x = x.astype(jnp.float32)
    v = v.astype(jnp.float32)

    # Fused weights: one MXU pass over x yields both (x @ v)^T and the linear term.
    vw = jnp.concatenate([v.T, jnp.reshape(w, (1, p)).astype(jnp.float32)], axis=0)  # (k+1, p)
    # One-time algebraic reduction: sum_k((x^2) @ (v^2)) == (x^2) @ rowsum(v^2).
    s = jnp.sum(v * v, axis=1).reshape(1, p)                                          # (1, p)
    b_smem = jnp.reshape(b, (1, 1)).astype(jnp.float32)

    tile_n, chunk = _pick_tiles(n, p, tile_n, chunk)
    num_tiles = pl.cdiv(n, tile_n)
    num_chunks = tile_n // chunk

    kernel = functools.partial(fm_kernel, k=k, chunk=chunk, num_chunks=num_chunks)
    cost = pl.CostEstimate(
        flops=int(2 * n * p * (k + 2) + 8 * n),
        transcendentals=0,
        bytes_accessed=int(4 * (n * p + n + p * (k + 2))),
    )

    out = pl.pallas_call(
        kernel,
        out_shape=jax.ShapeDtypeStruct((1, num_tiles * tile_n), jnp.float32),
        grid=(num_tiles,),
        in_specs=[
            pl.BlockSpec((tile_n, p), lambda i: (i, 0)),          # x: streamed over N
            pl.BlockSpec((k + 1, p), lambda i: (0, 0)),           # [v^T ; w]: VMEM-resident
            pl.BlockSpec((1, p), lambda i: (0, 0)),               # rowsum(v^2): resident
            pl.BlockSpec(memory_space=pltpu.MemorySpace.SMEM),    # bias scalar
        ],
        out_specs=pl.BlockSpec((1, tile_n), lambda i: (0, i)),    # lane-dense output slab
        compiler_params=pltpu.CompilerParams(
            dimension_semantics=("parallel",),
            vmem_limit_bytes=_vmem_limit(tile_n, chunk, p)),
        cost_estimate=cost,
    )(x, vw, s, b_smem)

    # TODO(synk): nn.Dropout(pair_interactions) in the reference forward discards
    # its result, so it has no effect on the output and is intentionally omitted.
    return out[0, :n].reshape(n, 1)


if __name__ == "__main__":
    # Small FM problem: batch N=1024, features p=32, factors k=16.
    N, p, k = 1024, 32, 16

    key = jax.random.PRNGKey(0)
    kx, kw, kb, kv = jax.random.split(key, 4)

    x = jax.random.normal(kx, (N, p), dtype=jnp.float32)

    # Deterministic params mirroring the PyTorch module's __init__:
    #  - nn.Linear(p, 1): uniform(-1/sqrt(p), 1/sqrt(p)) for weight & bias
    #  - v: uniform(-0.01, 0.01)
    bound = 1.0 / (p ** 0.5)
    w = jax.random.uniform(kw, (1, p), minval=-bound, maxval=bound, dtype=jnp.float32)
    b = jax.random.uniform(kb, (1, 1), minval=-bound, maxval=bound, dtype=jnp.float32)
    v = jax.random.uniform(kv, (p, k), minval=-0.01, maxval=0.01, dtype=jnp.float32)

    # Exercise the pipelined multi-step grid (2 steps) and the inner chunk loop (4 chunks).
    out = fm_forward(x, v, w, b, tile_n=512, chunk=128)
    out = jax.block_until_ready(out)

    # Pure-JAX reference using the ORIGINAL (un-simplified) FM math.
    ref = x @ w.T + b[0, 0] + 0.5 * jnp.sum((x @ v) ** 2 - (x * x) @ (v * v),
                                            axis=1, keepdims=True)
    assert out.shape == (N, 1)
    assert jnp.allclose(out, ref, atol=1e-4, rtol=1e-4), float(jnp.max(jnp.abs(out - ref)))

    # Also exercise the default (auto-sized) tiling path.
    out2 = jax.block_until_ready(fm_forward(x, v, w, b))
    assert jnp.allclose(out2, ref, atol=1e-4, rtol=1e-4)

    print("KERNEL_OK")
</pallas_src>

<mosaic_0001>
module attributes {stable_mosaic.version = 11 : i64} {
  func.func @fm_kernel(%arg0: i32, %arg1: memref<512x32xf32, #tpu.memory_space<vmem>>, %arg2: memref<17x32xf32, #tpu.memory_space<vmem>>, %arg3: memref<1x32xf32, #tpu.memory_space<vmem>>, %arg4: memref<1x1xf32, #tpu.memory_space<smem>>, %arg5: memref<1x512xf32, #tpu.memory_space<vmem>>) attributes {dimension_semantics = [#tpu.dimension_semantics<parallel>], iteration_bounds = array<i64: 2>, scalar_prefetch = 0 : i64, scratch_operands = 0 : i64, tpu.core_type = #tpu.core_type<tc>, window_params = [{transform_indices = @transform_0, window_bounds = array<i64: 512, 32>}, {pipeline_mode = #tpu.pipeline_mode<synchronous>, transform_indices = @transform_1, window_bounds = array<i64: 17, 32>}, {pipeline_mode = #tpu.pipeline_mode<synchronous>, transform_indices = @transform_2, window_bounds = array<i64: 1, 32>}, {transform_indices = @transform_3, window_bounds = array<i64: 1, 1>}, {transform_indices = @transform_4, window_bounds = array<i64: 1, 512>}]} {
    %c0 = arith.constant 0 : index
    %c0_0 = arith.constant 0 : index
    %0 = vector.load %arg2[%c0, %c0_0] : memref<17x32xf32, #tpu.memory_space<vmem>>, vector<17x32xf32>
    %c0_1 = arith.constant 0 : index
    %c0_2 = arith.constant 0 : index
    %1 = vector.load %arg3[%c0_1, %c0_2] : memref<1x32xf32, #tpu.memory_space<vmem>>, vector<1x32xf32>
    %c0_3 = arith.constant 0 : index
    %c0_4 = arith.constant 0 : index
    %2 = memref.load %arg4[%c0_3, %c0_4] : memref<1x1xf32, #tpu.memory_space<smem>>
    %c0_i32 = arith.constant 0 : i32
    %c4_i32 = arith.constant 4 : i32
    %3 = arith.addi %c0_i32, %c4_i32 : i32
    %c1_i32 = arith.constant 1 : i32
    scf.for %arg6 = %c0_i32 to %3 step %c1_i32  : i32 {
      %c128_i32 = arith.constant 128 : i32
      %4 = arith.muli %arg6, %c128_i32 : i32
      %5 = tpu.assume_multiple %4, 128 : i32
      %6 = arith.index_cast %5 : i32 to index
      %c0_6 = arith.constant 0 : index
      %7 = vector.load %arg1[%6, %c0_6] : memref<512x32xf32, #tpu.memory_space<vmem>>, vector<128x32xf32>
      %cst = arith.constant dense<0.000000e+00> : vector<17x128xf32>
      %8 = tpu.matmul %0, %7, %cst {dimension_numbers = #tpu.dot_dimension_numbers<[1], [1], [0], [0], [0, 0, 1, 0], [], []>} : vector<17x32xf32>, vector<128x32xf32>, vector<17x128xf32> -> vector<17x128xf32>
      %9 = arith.mulf %7, %7 : vector<128x32xf32>
      %cst_7 = arith.constant dense<0.000000e+00> : vector<1x128xf32>
      %10 = tpu.matmul %1, %9, %cst_7 {dimension_numbers = #tpu.dot_dimension_numbers<[1], [1], [0], [0], [0, 0, 1, 0], [], []>} : vector<1x32xf32>, vector<128x32xf32>, vector<1x128xf32> -> vector<1x128xf32>
      %11 = vector.extract_strided_slice %8 {offsets = [0, 0], sizes = [16, 128], strides = [1, 1]} : vector<17x128xf32> to vector<16x128xf32>
      %12 = arith.mulf %11, %11 : vector<16x128xf32>
      %cst_8 = arith.constant dense<0.000000e+00> : vector<128xf32>
      %13 = vector.multi_reduction <add>, %12, %cst_8 [0] : vector<16x128xf32> to vector<128xf32>
      %14 = vector.shape_cast %13 : vector<128xf32> to vector<1x128xf32>
      %15 = vector.extract_strided_slice %8 {offsets = [16, 0], sizes = [1, 128], strides = [1, 1]} : vector<17x128xf32> to vector<1x128xf32>
      %16 = vector.broadcast %2 : f32 to vector<1x128xf32>
      %17 = arith.addf %15, %16 : vector<1x128xf32>
      %18 = arith.subf %14, %10 : vector<1x128xf32>
      %cst_9 = arith.constant 5.000000e-01 : f32
      %19 = vector.broadcast %cst_9 : f32 to vector<1x128xf32>
      %20 = arith.mulf %19, %18 : vector<1x128xf32>
      %21 = arith.addf %17, %20 : vector<1x128xf32>
      %c0_10 = arith.constant 0 : index
      %22 = arith.index_cast %5 : i32 to index
      %23 = vector.load %arg5[%c0_10, %22] : memref<1x512xf32, #tpu.memory_space<vmem>>, vector<1x128xf32>
      tpu.vector_store %arg5[%c0_10, %22], %21 {strides = array<i32>} : memref<1x512xf32, #tpu.memory_space<vmem>>, vector<1x128xf32>,
    }
    %c4_i32_5 = arith.constant 4 : i32
    return
  }
  func.func @transform_0(%arg0: i32) -> (i32, i32) {
    %c0_i32 = arith.constant 0 : i32
    %c0_i32_0 = arith.constant 0 : i32
    return %arg0, %c0_i32 : i32, i32
  }
  func.func @transform_1(%arg0: i32) -> (i32, i32) {
    %c0_i32 = arith.constant 0 : i32
    %c0_i32_0 = arith.constant 0 : i32
    %c0_i32_1 = arith.constant 0 : i32
    return %c0_i32, %c0_i32_0 : i32, i32
  }
  func.func @transform_2(%arg0: i32) -> (i32, i32) {
    %c0_i32 = arith.constant 0 : i32
    %c0_i32_0 = arith.constant 0 : i32
    %c0_i32_1 = arith.constant 0 : i32
    return %c0_i32, %c0_i32_0 : i32, i32
  }
  func.func @transform_3(%arg0: i32) -> (i32, i32) {
    %c0_i32 = arith.constant 0 : i32
    %c0_i32_0 = arith.constant 0 : i32
    %c0_i32_1 = arith.constant 0 : i32
    return %c0_i32, %c0_i32_0 : i32, i32
  }
  func.func @transform_4(%arg0: i32) -> (i32, i32) {
    %c0_i32 = arith.constant 0 : i32
    %c0_i32_0 = arith.constant 0 : i32
    return %c0_i32, %arg0 : i32, i32
  }
}

</mosaic_0001>

<bundles_post_ra>
// kernel: tpu_custom_call.1
= control target key start
LH: loop header
LB: loop body
LE: loop exit
PB: predicated region body
PF: predicated region fallthrough
CT: control target
= control target key end

     0   :  { %s1219_s0 = inlined_call_operand.vmem [shape: f32[1024,32], index: 0, kind: input, shape index: {}]   ;;  %s1220_s1 = inlined_call_operand.vmem [shape: f32[17,32], index: 1, kind: input, shape index: {}]   ;;  %s1221_s2 = inlined_call_operand.vmem [shape: f32[1,32], index: 2, kind: input, shape index: {}]   ;;  %s1222_s3 = inlined_call_operand.<no memory space> [shape: f32[1,1], index: 3, kind: input, shape index: {}]   ;;  %s1223_s4 = inlined_call_operand.hbm [shape: f32[1,1024], index: 4, kind: output, shape index: {}]  }
   0x1   :  { %9 = sst [smem:[#allocation2]] %s1222_s3 }
   0x2   :  { %10 = vsyncpa [#allocation4], 0 }
   0x3   :  { %12 = vsyncpa [#allocation4 + $0x1], 0  ;;  %s988_s17 = smov 0   ;;  %s990_s18 = smov 0  }
   0x4   :  { %s992_s19 = smov 0   ;;  %s994_s20 = smov 0  }
   0x5 LB: > { %s607_s3 = sadd.s32 4294967295, %s950_s20   ;;  %s608_s21 = sadd.s32 4294967294, %s950_s20   ;;  %s950_s20 = sphi %s994_s20, %s1231_s20   ;;  %s946_s19 = sphi %s992_s19, %s1230_s19   ;;  %s942_s18 = sphi %s990_s18, %s1229_s18   ;;  %s938_s17 = sphi %s988_s17, %s1228_s17  }
   0x6   : > { %s1011_s22 = sadd.s32 1, %s950_s20   ;;  %s114_s23 = sadd.s32 1, %s946_s19 }
   0x7   : > { %s111_s24 = ssub.s32 %s950_s20, %s1011_s22  ;;  %p124_p0 = scmp.ne.s32.totalorder %s946_s19, %s942_s18 }
   0x8   : > { %p112_p1 = scmp.eq.s32.totalorder %s111_s24, 0  ;;  %p125_p2 = scmp.eq.s32.totalorder %s607_s3, 1 }
   0x9   : > { %p130_p3 = scmp.ne.s32.totalorder %s942_s18, %s938_s17  ;;  %p131_p4 = scmp.eq.s32.totalorder %s608_s21, 1 }
   0xa   : > { %s1021_s25 = scalar_select %p112_p1, %s946_s19, %s114_s23  }
   0xb   : > { %p1023_p5 = por %p125_p2, %p124_p0  ;;  %p1027_p6 = por %p131_p4, %p130_p3 }
   0xc   : > { %p611_p7 = scmp.ge.s32.totalorder %s950_s20, 1  ;;  %p167_p8 = scmp.lt.s32.totalorder %s950_s20, 3 }
   0xe   : > { %p168_p9 = pnand %p611_p7, %p167_p8 }
   0xf   : > { %s190_s28 = sand.u32 (!%p168_p9), 1, %s942_s18   ;;  %s1034_s29 = sshll.u32 (!%p168_p9), %s607_s3, 6  ;;  %v1039_v0 = vld [vmem:[%s1220_s1] sm:$0xff] (!%p168_p9)  ;;  %v1044_v1 = vld [vmem:[%s1220_s1 + $0x8] sm:$0xff] (!%p168_p9)  ;;  %v1049_v2 = vld [vmem:[%s1220_s1 + $0x10] sm:$0x1] (!%p168_p9) }
  0x10   : > { %171 = sbr.rel (%p168_p9) target bundleno = 347 (0x15b), region = 36  ;;  %s1053_s10 = sshll.u32 (!%p168_p9), %s190_s28, 2  ;;  %v1059_v3 = vld [vmem:[%s1221_s2] sm:$0x1] (!%p168_p9) }
  0x11   : > { %p194_p10 = scmp.lt.s32.totalorder (!%p168_p9), %s1034_s29, 127  ;;  %s1061_s13 = sld [smem:[#allocation2]] (!%p168_p9) }
  0x12   : > { %s192_s23 = scalar_lea.vmem (!%p168_p9), [#allocation3], %s1053_s10  ;;  %s1070_s24 = smov (!%p168_p9), 0  }
  0x17   : > { %s195_s14 = scalar_select %p194_p10, %s1034_s29, 127 }
  0x19   : > { %s614_s15 = sshll.u32 %s195_s14, 3 }
  0x1a   : > { %s1067_s21 = scalar_lea.vmem %s1219_s0, %s614_s15 }
  0x1b LB: >> { %v956_v4 = vmov 0.0|0.0   ;;  %vm229_vm0 = vcmask 261120   ;;  %s615_s30 = sshll.u32 %s954_s24, 7  ;;  %vm957_vm1 = vmmov 0   ;;  %v958_v5 = vmov 0.0   ;;  %s210_s24 = sadd.s32 1, %s954_s24   ;;  %s954_s24 = sphi %s1070_s24, %s210_s24  }
  0x1c   : >> { %770 = vmatprep.subr.bf16.mxu0 %v956_v4  ;;  %802 = vmatprep.subr.bf16.mxu1 %v956_v4  ;;  %s1085_s5 = scalar_lea.vmem %s1067_s21, %s615_s30  ;;  %vm1091_vm2 = vmpackc.low %vm229_vm0, %vm229_vm0  ;;  %s518_s6 = sshra.s32 %s615_s30, 7 }
  0x1d   : >> { %726 = vmatprep.mubr.msk.f32.mxu0 %vm957_vm1, %v958_v5  ;;  %767 = vmatprep.mubr.msk.f32.mxu1 %vm957_vm1, %v958_v5  ;;  %v213_v6 = vld [vmem:[%s1085_s5] sm:$0xff]  ;;  %v214_v7 = vld [vmem:[%s1085_s5 + $0x8] sm:$0xff]  ;;  %v215_v13 = vld [vmem:[%s1085_s5 + $0x10] sm:$0xff]  ;;  %s520_s7 = scalar_lea.vmem %s192_s23, %s518_s6 [#allocation3]  ;;  %p207_p11 = scmp.ge.s32.totalorder %s210_s24, 4  }
  0x1e   : >> { %v771_v9 = vpack.c.bf16 %v214_v7, %v213_v6  ;;  %v367_v10 = vmul.f32 %v213_v6, %v213_v6  ;;  %v368_v11 = vmul.f32 %v214_v7, %v214_v7  ;;  %v216_v14 = vld [vmem:[%s1085_s5 + $0x18] sm:$0xff]  ;;  %v369_v15 = vmul.f32 %v215_v13, %v215_v13  ;;  %v217_v19 = vld [vmem:[%s1085_s5 + $0x20] sm:$0xff]  ;;  %v218_v20 = vld [vmem:[%s1085_s5 + $0x28] sm:$0xff]  ;;  %s1179_s11 = scalar_lea.hbm (%p207_p11), %s1223_s4, %s1034_s29  ;;  %s541_s12 = sshll.u32 (%p207_p11), %s192_s23, 4  ;;  %s542_s12 = int_to_ptr.vmem [resolvable:$true] %s541_s12 }
  0x1f   : >> { %v370_v16 = vmul.f32 %v216_v14, %v216_v14  ;;  %v775_v17 = vpack.c.bf16 %v216_v14, %v215_v13  ;;  %v371_v21 = vmul.f32 %v217_v19, %v217_v19  ;;  %v372_v22 = vmul.f32 %v218_v20, %v218_v20  ;;  %v219_v25 = vld [vmem:[%s1085_s5 + $0x30] sm:$0xff]  ;;  %v220_v26 = vld [vmem:[%s1085_s5 + $0x38] sm:$0xff]  ;;  %v221_v31 = vld [vmem:[%s1085_s5 + $0x40] sm:$0xff]  ;;  %s527_s14 = scalar_lea.sflag (%p207_p11), [#allocation4], %s190_s28  ;;  %s884_s15 = scalar_lea.vmem (%p207_p11), %s542_s12, 64 }
  0x20   : >> { %773 = vmatpush3.bf16.xpose.msk.msra.mxu0 %vm1091_vm2, %v771_v9  ;;  %v803_v12 = vpack.c.bf16 %v368_v11, %v367_v10  ;;  %v779_v23 = vpack.c.bf16 %v218_v20, %v217_v19  ;;  %v373_v27 = vmul.f32 %v219_v25, %v219_v25  ;;  %v374_v28 = vmul.f32 %v220_v26, %v220_v26  ;;  %v222_v32 = vld [vmem:[%s1085_s5 + $0x48] sm:$0xff]  ;;  %v223_v37 = vld [vmem:[%s1085_s5 + $0x50] sm:$0xff]  ;;  %v224_v38 = vld [vmem:[%s1085_s5 + $0x58] sm:$0xff]  ;;  %p885_p12 = scmp.ne.s32.totalorder (%p207_p11), %s542_s12, %s884_s15  ;;  %s959_s16 = smov (%p207_p11), [#allocation3]  }
  0x21   : >> { %774 = vmatprep.subr.bf16.mxu0 %v956_v4  ;;  %v807_v18 = vpack.c.bf16 %v370_v16, %v369_v15  ;;  %v811_v24 = vpack.c.bf16 %v372_v22, %v371_v21  ;;  %v783_v29 = vpack.c.bf16 %v220_v26, %v219_v25  ;;  %v375_v33 = vmul.f32 %v221_v31, %v221_v31  ;;  %v225_v43 = vld [vmem:[%s1085_s5 + $0x60] sm:$0xff]  ;;  %v226_v44 = vld [vmem:[%s1085_s5 + $0x68] sm:$0xff]  ;;  %v227_v49 = vld [vmem:[%s1085_s5 + $0x70] sm:$0xff] }
  0x22   : >> { %805 = vmatpush3.bf16.xpose.msk.msra.mxu1 %vm1091_vm2, %v803_v12  ;;  %v815_v30 = vpack.c.bf16 %v374_v28, %v373_v27  ;;  %v376_v34 = vmul.f32 %v222_v32, %v222_v32  ;;  %v787_v35 = vpack.c.bf16 %v222_v32, %v221_v31  ;;  %v377_v39 = vmul.f32 %v223_v37, %v223_v37  ;;  %v228_v50 = vld [vmem:[%s1085_s5 + $0x78] sm:$0xff]  ;;  %p886_p13 = pnand (%p207_p11), %p885_p12, %p1023_p5 }
  0x23   : >> { %806 = vmatprep.subr.bf16.mxu1 %v956_v4  ;;  %v378_v40 = vmul.f32 %v224_v38, %v224_v38  ;;  %v791_v41 = vpack.c.bf16 %v224_v38, %v223_v37  ;;  %v379_v45 = vmul.f32 %v225_v43, %v225_v43  ;;  %v380_v46 = vmul.f32 %v226_v44, %v226_v44 }
  0x24   : >> { %v819_v36 = vpack.c.bf16 %v376_v34, %v375_v33  ;;  %v795_v47 = vpack.c.bf16 %v226_v44, %v225_v43  ;;  %v381_v51 = vmul.f32 %v227_v49, %v227_v49  ;;  %v382_v52 = vmul.f32 %v228_v50, %v228_v50  ;;  %p887_p0 = pneg (%p207_p11), %p886_p13 }
  0x25   : >> { %v823_v42 = vpack.c.bf16 %v378_v40, %v377_v39  ;;  %v827_v48 = vpack.c.bf16 %v380_v46, %v379_v45  ;;  %v799_v53 = vpack.c.bf16 %v228_v50, %v227_v49  ;;  %v513_v11 = vstv %s1061_s13  ;;  %s888_s13 = sshll.u32 (%p207_p11), %s959_s16, 4  ;;  %s889_s13 = int_to_ptr.vmem [resolvable:$false] %s888_s13 }
  0x26   : >> { %v831_v54 = vpack.c.bf16 %v382_v52, %v381_v51  ;;  %v521_v13 = vlaneseq  ;;  %s890_s3 = scalar_lea.vmem (%p207_p11), %s889_s13, 128  ;;  %p891_p1 = scmp.lt.s32.totalorder (%p207_p11), %s542_s12, %s889_s13 }
  0x27   : > { %p892_p2 = scmp.lt.s32.totalorder (%p207_p11), %s890_s3, %s884_s15 }
  0x28   : >> { %777 = vmatpush3.bf16.xpose.msk.msra.mxu0 %vm1091_vm2, %v775_v17  ;;  %vm523_vm3 = vcmp.lt.s32.totalorder %v521_v13, 128 }
  0x29   : >> { %778 = vmatprep.subr.bf16.mxu0 %v956_v4  ;;  %p893_p3 = por (%p207_p11), %p892_p2, %p891_p1 }
  0x2a   : >> { %809 = vmatpush3.bf16.xpose.msk.msra.mxu1 %vm1091_vm2, %v807_v18 }
  0x2b   : >> { %810 = vmatprep.subr.bf16.mxu1 %v956_v4  ;;  %p894_p4 = pnand (%p207_p11), %p893_p3, %p887_p0 }
  0x30   : >> { %781 = vmatpush3.bf16.xpose.msk.msra.mxu0 %vm1091_vm2, %v779_v23 }
  0x31   : >> { %782 = vmatprep.subr.bf16.mxu0 %v956_v4 }
  0x32   : >> { %813 = vmatpush3.bf16.xpose.msk.msra.mxu1 %vm1091_vm2, %v811_v24 }
  0x33   : >> { %814 = vmatprep.subr.bf16.mxu1 %v956_v4 }
  0x38   : >> { %785 = vmatpush3.bf16.xpose.msk.msra.mxu0 %vm1091_vm2, %v783_v29 }
  0x39   : >> { %786 = vmatprep.subr.bf16.mxu0 %v956_v4 }
  0x3a   : >> { %817 = vmatpush3.bf16.xpose.msk.msra.mxu1 %vm1091_vm2, %v815_v30 }
  0x3b   : >> { %818 = vmatprep.subr.bf16.mxu1 %v956_v4 }
  0x40   : >> { %789 = vmatpush3.bf16.xpose.msk.msra.mxu0 %vm1091_vm2, %v787_v35 }
  0x41   : >> { %790 = vmatprep.subr.bf16.mxu0 %v956_v4 }
  0x42   : >> { %821 = vmatpush3.bf16.xpose.msk.msra.mxu1 %vm1091_vm2, %v819_v36 }
  0x43   : >> { %822 = vmatprep.subr.bf16.mxu1 %v956_v4 }
  0x48   : >> { %793 = vmatpush3.bf16.xpose.msk.msra.mxu0 %vm1091_vm2, %v791_v41 }
  0x49   : >> { %794 = vmatprep.subr.bf16.mxu0 %v956_v4 }
  0x4a   : >> { %825 = vmatpush3.bf16.xpose.msk.msra.mxu1 %vm1091_vm2, %v823_v42 }
  0x4b   : >> { %826 = vmatprep.subr.bf16.mxu1 %v956_v4 }
  0x50   : >> { %797 = vmatpush3.bf16.xpose.msk.msra.mxu0 %vm1091_vm2, %v795_v47 }
  0x51   : >> { %798 = vmatprep.subr.bf16.mxu0 %v956_v4 }
  0x52   : >> { %829 = vmatpush3.bf16.xpose.msk.msra.mxu1 %vm1091_vm2, %v827_v48 }
  0x53   : >> { %830 = vmatprep.subr.bf16.mxu1 %v956_v4 }
  0x58   : >> { %801 = vmatpush3.bf16.xpose.msk.msra.mxu0 %vm1091_vm2, %v799_v53 }
  0x5a   : >> { %833 = vmatpush3.bf16.xpose.msk.msra.mxu1 %vm1091_vm2, %v831_v54 }
  0x5f   : >> { %727 = vmatmul.mubr.msk.f32.vlgmr.msra.gmra.mrb[0].mxu0 %vm229_vm0, %v1039_v0 }
  0x60   : >> { %729 = vmatprep.mubr.msk.f32.mxu0 %vm957_vm1, %v958_v5 }
  0x61   : >> { %768 = vmatmul.mubr.msk.f32.vlgmr.msra.gmra.mrb[0].mxu1 %vm229_vm0, %v1059_v3 }
  0x63   : >> { %730 = vmatmul.mubr.msk.f32.gmra.mrb[2].mxu0 %vm229_vm0, %v1044_v1 }
  0x64   : >> { %732 = vmatprep.mubr.msk.f32.mxu0 %vm957_vm1, %v958_v5 }
  0x67   : >> { %733 = vmatmul.mubr.msk.f32.gmra.mrb[4].mxu0 %vm229_vm0, %v1049_v2 }
 0x132   : >> { %v353_v55 = vpop.f32.mrb[0].mxu0 }
 0x133   : >> { %v728_v56 = vpop.f32.mrb[1].mxu0  ;;  %v504_v60 = vmul.f32 %v353_v55, %v353_v55 }
 0x134   : >> { %v500_v57 = vpop.f32.mrb[0].mxu1 }
 0x135   : >> { %v769_v58 = vpop.f32.mrb[1].mxu1 }
 0x136   : >> { %v358_v59 = vpop.f32.mrb[2].mxu0 }
 0x137   : >> { %v505_v61 = vmul.f32 %v358_v59, %v358_v59  ;;  %v731_v62 = vpop.f32.mrb[3].mxu0 }
 0x139   : >> { %v506_v63 = vadd.f32 %v505_v61, %v504_v60 }
 0x13a   : >> { %v363_v4 = vpop.f32.mrb[4].mxu0 }
 0x13b   : >> { %v507_v6 = vrot.slane %v506_v63, 4  ;;  %v734_v7 = vpop.f32.mrb[5].mxu0  ;;  %v514_v15 = vadd.f32 %v513_v11, %v363_v4 }
 0x13d   : >> { %v508_v8 = vadd.f32 %v507_v6, %v506_v63 }
 0x13f   : >> { %v509_v5 = vrot.slane %v508_v8, 2 }
 0x141   : >> { %v510_v9 = vadd.f32 %v509_v5, %v508_v8 }
 0x143   : >> { %v511_v10 = vrot.slane %v510_v9, 1 }
 0x145   : >> { %v512_v12 = vadd.f32 %v511_v10, %v510_v9 }
 0x147   : >> { %v515_v14 = vsub.f32 %v512_v12, %v500_v57  ;;  %209 = sbr.rel (!%p207_p11) target bundleno = 27 (0x1b), region = 80 }
 0x149   : >> { %v516_v16 = vmul.f32 0.5, %v515_v14 }
 0x14b   : >> { %v517_v17 = vadd.f32 %v516_v16, %v514_v15 }
 0x14d   : >> { %525 = vst.msk [vmem:[%s520_s7] sm:$0x1] %vm523_vm3, %v517_v17 }
 0x14e   : > { %897 = shalt.err (!%p894_p4)
}
 0x14f   : > { %s898_s28 = scalar_lea.hbm %s1179_s11, 64  ;;  %s902_s21 = scalar_lea.hbm %s1223_s4, 128 }
 0x150   : > { %p899_p7 = scmp.ne.s32.totalorder %s1179_s11, %s898_s28  ;;  %p903_p10 = scmp.lt.u32.totalorder %s1179_s11, %s1223_s4 }
 0x151   : > { %p904_p11 = scmp.lt.u32.totalorder %s902_s21, %s898_s28  ;;  %p906_p13 = scmp.lt.u32.totalorder %s898_s28, %s1179_s11 }
 0x152   : > { %p900_p8 = pnand %p899_p7, %p1023_p5 }
 0x153   : > { %p905_p12 = por %p904_p11, %p903_p10 }
 0x154   : > { %p901_p9 = pneg %p900_p8 }
 0x155   : > { %p907_p0 = por %p906_p13, %p905_p12 }
 0x157   : > { %p908_p1 = pnand %p907_p0, %p901_p9 }
 0x159   : > { %911 = shalt.err (!%p908_p1)
}
 0x15a   : > { %834 = dma.vmem_to_hbm [thread:$0]  (%p1023_p5), %s542_s12, 64, %s1179_s11, %s527_s14  }
 0x15b PF: > { %p840_p2 = scmp.ge.s32.totalorder %s950_s20, 2  ;;  %s553_s30 = sand.u32 1, %s938_s17  }
 0x15c   : > { %s554_s5 = scalar_lea.sflag [#allocation4], %s553_s30 }
 0x15d   : > { %p837_p3 = pnand %p840_p2, %p1027_p6 }
 0x15f   : > { %933 = dma.done.wait (!%p837_p3), %s554_s5, 64  }
 0x160   : > { %935 = vsyncadd (!%p837_p3), %s554_s5, 4294967232  ;;  %p15_p4 = scmp.ge.s32.totalorder %s1011_s22, 4   ;;  %s1228_s17 = smov %s942_s18 }
 0x161   : > { %s1229_s18 = smov %s946_s19  ;;  %s1230_s19 = smov %s1021_s25 }
 0x162   : > { %s1231_s20 = smov %s1011_s22  ;;  %17 = sbr.rel (!%p15_p4) target bundleno = 5 (0x5), region = 91 }
 0x169   :  { %559 = vsyncpa [#allocation4], 1 }
 0x16a   :  { %561 = vsyncpa [#allocation4 + $0x1], 1 }

</bundles_post_ra>
